<compile_context>
chip_gen: v5e
topology: v5e:2x2
jax: 0.10.0
libtpu: 0.0.40
codegen_flags: <defaults>
</compile_context>

<pallas_src>
import functools
import math

import jax
import jax.numpy as jnp
from jax.experimental import pallas as pl
from jax.experimental.pallas import tpu as pltpu


# f32-equivalent element budget per input tile (~2 MiB f32): big enough to sit on the HBM
# roofline plateau, small enough that double-buffered I/O + f32 temporaries fit v7x VMEM.
_TARGET_TILE_ELEMS = 512 * 1024


# ----------------------------------------------------------------------------
# Kernels (one fused pass: stats + normalize + affine)
# ----------------------------------------------------------------------------
def _ln_channels_last_kernel(x_ref, g_ref, b_ref, o_ref, *, eps):
    # x:(TM, C)  g,b:(1, C) f32  o:(TM, C) — normalize each row over the lane (C) axis.
    x = x_ref[...].astype(jnp.float32)
    inv_c = 1.0 / x.shape[-1]
    mean = jnp.sum(x, axis=-1, keepdims=True) * inv_c
    d = x - mean                                              # two-pass variance (f32)
    var = jnp.sum(d * d, axis=-1, keepdims=True) * inv_c
    r = jax.lax.rsqrt(var + eps)                              # EUP rsqrt
    o_ref[...] = (d * r * g_ref[...] + b_ref[...]).astype(o_ref.dtype)


def _ln_channels_last_folded_kernel(x_ref, g_ref, b_ref, s_ref, st_ref, o_ref, *, eps, c):
    # Lane-dense path for C < 128: k rows folded per lane-row of width k*C (multiple of 128).
    # x:(TM, k*C)  g,b:(1, k*C) f32  S:(k*C, k)  St:(k, k*C).
    x = x_ref[...].astype(jnp.float32)
    S = s_ref[...]
    St = st_ref[...]
    inv_c = 1.0 / c
    mean = jnp.dot(x, S, preferred_element_type=jnp.float32) * inv_c       # (TM, k)
    mean_b = jnp.dot(mean, St, preferred_element_type=jnp.float32)         # (TM, k*C)
    d = x - mean_b
    var = jnp.dot(d * d, S, preferred_element_type=jnp.float32) * inv_c    # (TM, k)
    r = jax.lax.rsqrt(var + eps)
    r_b = jnp.dot(r, St, preferred_element_type=jnp.float32)               # (TM, k*C)
    o_ref[...] = (d * r_b * g_ref[...] + b_ref[...]).astype(o_ref.dtype)


def _ln_channels_first_kernel(x_ref, g_ref, b_ref, o_ref, *, eps):
    # x:(C, TN)  g,b:(C, 1) f32  o:(C, TN) — normalize each pixel (lane) over sublanes (C).
    x = x_ref[...].astype(jnp.float32)
    inv_c = 1.0 / x.shape[0]
    mean = jnp.sum(x, axis=0, keepdims=True) * inv_c
    d = x - mean
    var = jnp.sum(d * d, axis=0, keepdims=True) * inv_c
    r = jax.lax.rsqrt(var + eps)
    o_ref[...] = (d * r * g_ref[...] + b_ref[...]).astype(o_ref.dtype)


# ----------------------------------------------------------------------------
# Tiling / compiler-parameter helpers
# ----------------------------------------------------------------------------
def _pick_tile(n, align, row_elems, target_elems):
    """Largest `align`-aligned tile along an independent axis, element-budgeted.

    Prefer an exact divisor of `n` only if it is >= half the budget cap (tiny divisors
    explode the grid at ~0.35 us/step); otherwise accept the cap with a masked tail block,
    which is safe since rows/pixels are independent."""
    if n * row_elems <= target_elems:
        return n                                              # full extent: always legal
    cap = max(align, (target_elems // max(1, row_elems)) // align * align)
    cap = min(cap, max(align, (n // align) * align))
    d = cap
    while d >= max(align, cap // 2):
        if n % d == 0:
            return d
        d -= align
    return cap                                                # masked tail block


def _compiler_params(n_grid_axes, tile_elems, itemsize, extra_bytes=0):
    # 2x double-buffered input + 2x output tiles (I/O dtype) + the in-kernel f32 working
    # set + resident params + slack, capped at 32 MiB so it fits v7x's 64 MiB VMEM.
    vmem = 4 * tile_elems * itemsize + 6 * tile_elems * 4 + extra_bytes + (2 << 20)
    vmem = int(min(32 << 20, max(8 << 20, vmem)))
    return pltpu.CompilerParams(
        # "parallel" is the documented megacore sharding knob; purely mem-bound kernel.
        # TODO(synk): A/B pltpu.CORE_PARALLEL on the leading axis for v7x (2 TCs per chip).
        dimension_semantics=("parallel",) * n_grid_axes,
        vmem_limit_bytes=vmem,
    )


# ----------------------------------------------------------------------------
# Forward wrapper
# ----------------------------------------------------------------------------
def hor_layer_norm(x, weight, bias, *, eps=1e-6, data_format="channels_last",
                   target_tile_elems=_TARGET_TILE_ELEMS):
    """Pallas TPU forward pass of HorLayerNorm (both data formats)."""
    eps = float(eps)
    weight = weight.astype(jnp.float32)   # affine params stay f32 (match PyTorch precision)
    bias = bias.astype(jnp.float32)

    if data_format == "channels_last":
        *lead, C = x.shape
        M = math.prod(lead) if lead else 1
        k = math.lcm(C, 128) // C         # rows folded per lane-row to reach lane density

        if k > 1 and M % k == 0 and k * C <= 4096:
            kc, mf = k * C, M // k
            xf = x.reshape(mf, kc)        # metadata-only reshape
            S = ((jnp.arange(kc, dtype=jnp.int32) // C)[:, None]
                 == jnp.arange(k, dtype=jnp.int32)[None, :]).astype(jnp.float32)  # (kc, k)
            St = S.T                                                              # (k, kc)
            g = jnp.tile(weight.reshape(1, C), (1, k))
            b = jnp.tile(bias.reshape(1, C), (1, k))
            tm = _pick_tile(mf, 8, kc, target_tile_elems)
            extra = 2 * kc * k * 4 + 2 * kc * 4
            out = pl.pallas_call(
                functools.partial(_ln_channels_last_folded_kernel, eps=eps, c=C),
                out_shape=jax.ShapeDtypeStruct((mf, kc), x.dtype),
                grid=(pl.cdiv(mf, tm),),
                in_specs=[
                    pl.BlockSpec((tm, kc), lambda i: (i, 0)),
                    pl.BlockSpec((1, kc), lambda i: (0, 0)),   # gamma: VMEM-resident
                    pl.BlockSpec((1, kc), lambda i: (0, 0)),   # beta : VMEM-resident
                    pl.BlockSpec((kc, k), lambda i: (0, 0)),   # S    : VMEM-resident
                    pl.BlockSpec((k, kc), lambda i: (0, 0)),   # S^T  : VMEM-resident
                ],
                out_specs=pl.BlockSpec((tm, kc), lambda i: (i, 0)),
                compiler_params=_compiler_params(1, tm * kc, x.dtype.itemsize, extra),
            )(xf, g, b, S, St)
            return out.reshape(x.shape)

        # Generic path: C already lane-dense, or M not divisible by the fold factor.
        xf = x.reshape(M, C)
        tm = _pick_tile(M, 8, C, target_tile_elems)
        out = pl.pallas_call(
            functools.partial(_ln_channels_last_kernel, eps=eps),
            out_shape=jax.ShapeDtypeStruct((M, C), x.dtype),
            grid=(pl.cdiv(M, tm),),
            in_specs=[
                pl.BlockSpec((tm, C), lambda i: (i, 0)),
                pl.BlockSpec((1, C), lambda i: (0, 0)),
                pl.BlockSpec((1, C), lambda i: (0, 0)),
            ],
            out_specs=pl.BlockSpec((tm, C), lambda i: (i, 0)),
            compiler_params=_compiler_params(1, tm * C, x.dtype.itemsize),
        )(xf, weight.reshape(1, C), bias.reshape(1, C))
        return out.reshape(x.shape)

    elif data_format == "channels_first":
        B, C = x.shape[0], x.shape[1]
        HW = math.prod(x.shape[2:]) if x.ndim > 2 else 1
        xf = x.reshape(B, C, HW)          # native layout: lanes = pixels (lane-dense stores)
        tn = _pick_tile(HW, 128, C, target_tile_elems)
        out = pl.pallas_call(
            functools.partial(_ln_channels_first_kernel, eps=eps),
            out_shape=jax.ShapeDtypeStruct((B, C, HW), x.dtype),
            grid=(B, pl.cdiv(HW, tn)),
            in_specs=[
                pl.BlockSpec((pl.Squeezed(), C, tn), lambda bi, j: (bi, 0, j)),
                pl.BlockSpec((C, 1), lambda bi, j: (0, 0)),    # gamma: VMEM-resident
                pl.BlockSpec((C, 1), lambda bi, j: (0, 0)),    # beta : VMEM-resident
            ],
            out_specs=pl.BlockSpec((pl.Squeezed(), C, tn), lambda bi, j: (bi, 0, j)),
            compiler_params=_compiler_params(2, C * tn, x.dtype.itemsize),
        )(xf, weight.reshape(C, 1), bias.reshape(C, 1))
        return out.reshape(x.shape)

    raise NotImplementedError(data_format)


# ----------------------------------------------------------------------------
# Pure-JAX reference (mirrors the PyTorch module exactly)
# ----------------------------------------------------------------------------
def hor_layer_norm_ref(x, weight, bias, eps=1e-6, data_format="channels_last"):
    if data_format == "channels_last":
        u = x.mean(-1, keepdims=True)
        s = ((x - u) ** 2).mean(-1, keepdims=True)
        return (x - u) / jnp.sqrt(s + eps) * weight + bias
    u = x.mean(1, keepdims=True)
    s = ((x - u) ** 2).mean(1, keepdims=True)
    xn = (x - u) / jnp.sqrt(s + eps)
    return weight[None, :, None, None] * xn + bias[None, :, None, None]


# ----------------------------------------------------------------------------
if __name__ == "__main__":
    key = jax.random.PRNGKey(0)
    ks = jax.random.split(key, 9)
    tests = []

    # channels_first: (B, C, H, W) = (2, 4, 16, 16); tiny tile budget forces a multi-step
    # pipelined grid (tn=128 -> grid (2,2)) with VMEM-resident gamma/beta.
    B, C, H, W = 2, 4, 16, 16
    x_cf = 2.0 * jax.random.normal(ks[0], (B, C, H, W), jnp.float32) + 0.5
    g_cf = 1.0 + 0.1 * jax.random.normal(ks[1], (C,), jnp.float32)
    b_cf = 0.05 * jax.random.normal(ks[2], (C,), jnp.float32)
    o_cf = hor_layer_norm(x_cf, g_cf, b_cf, eps=1e-6, data_format="channels_first",
                          target_tile_elems=C * 128)
    tests.append(("channels_first", o_cf, hor_layer_norm_ref(x_cf, g_cf, b_cf, 1e-6,
                                                             "channels_first"), x_cf.shape))

    # channels_last, folded lane-dense path: C=32 -> k=4, folded width 128; small budget
    # forces a multi-step grid over the folded-row axis.
    B2, H2, W2, C2 = 2, 16, 16, 32
    x_cl = 1.5 * jax.random.normal(ks[3], (B2, H2, W2, C2), jnp.float32) - 0.25
    g_cl = 1.0 + 0.1 * jax.random.normal(ks[4], (C2,), jnp.float32)
    b_cl = 0.05 * jax.random.normal(ks[5], (C2,), jnp.float32)
    o_cl = hor_layer_norm(x_cl, g_cl, b_cl, eps=1e-6, data_format="channels_last",
                          target_tile_elems=48 * 128)
    tests.append(("channels_last_folded", o_cl, hor_layer_norm_ref(x_cl, g_cl, b_cl, 1e-6,
                                                                   "channels_last"), x_cl.shape))

    # channels_last, generic fallback: M=25 not divisible by the fold factor; tiny budget
    # exercises the masked-tail block path (grid of 4 with a partial last block).
    x_g = jax.random.normal(ks[6], (1, 5, 5, 24), jnp.float32)
    g_g = 1.0 + 0.1 * jax.random.normal(ks[7], (24,), jnp.float32)
    b_g = 0.05 * jax.random.normal(ks[8], (24,), jnp.float32)
    o_g = hor_layer_norm(x_g, g_g, b_g, eps=1e-6, data_format="channels_last",
                         target_tile_elems=8 * 24)
    tests.append(("channels_last_generic", o_g, hor_layer_norm_ref(x_g, g_g, b_g, 1e-6,
                                                                   "channels_last"), x_g.shape))

    ok = True
    for name, out, ref, shp in tests:
        out = jax.block_until_ready(out)
        err = float(jnp.max(jnp.abs(out - ref)))
        if out.shape != shp or not (err < 1e-3):
            ok = False
            print(f"FAIL {name}: shape={out.shape} expected={shp} max_err={err}")
    if not ok:
        raise SystemExit(1)
    print("KERNEL_OK")
</pallas_src>

<mosaic_0001>
module attributes {stable_mosaic.version = 11 : i64} {
  func.func @_ln_channels_first_kernel(%arg0: i32, %arg1: i32, %arg2: memref<1x4x128xf32, #tpu.memory_space<vmem>>, %arg3: memref<4x1xf32, #tpu.memory_space<vmem>>, %arg4: memref<4x1xf32, #tpu.memory_space<vmem>>, %arg5: memref<1x4x128xf32, #tpu.memory_space<vmem>>) attributes {dimension_semantics = [#tpu.dimension_semantics<parallel>, #tpu.dimension_semantics<parallel>], iteration_bounds = array<i64: 2, 2>, scalar_prefetch = 0 : i64, scratch_operands = 0 : i64, tpu.core_type = #tpu.core_type<tc>, window_params = [{transform_indices = @transform_0, window_bounds = array<i64: 1, 4, 128>}, {pipeline_mode = #tpu.pipeline_mode<synchronous>, transform_indices = @transform_1, window_bounds = array<i64: 4, 1>}, {pipeline_mode = #tpu.pipeline_mode<synchronous>, transform_indices = @transform_2, window_bounds = array<i64: 4, 1>}, {transform_indices = @transform_3, window_bounds = array<i64: 1, 4, 128>}]} {
    %c0 = arith.constant 0 : index
    %c0_0 = arith.constant 0 : index
    %c0_1 = arith.constant 0 : index
    %0 = vector.load %arg2[%c0, %c0_0, %c0_1] : memref<1x4x128xf32, #tpu.memory_space<vmem>>, vector<1x4x128xf32>
    %1 = vector.shape_cast %0 : vector<1x4x128xf32> to vector<4x128xf32>
    %cst = arith.constant dense<0.000000e+00> : vector<128xf32>
    %2 = vector.multi_reduction <add>, %1, %cst [0] : vector<4x128xf32> to vector<128xf32>
    %3 = vector.shape_cast %2 : vector<128xf32> to vector<1x128xf32>
    %cst_2 = arith.constant 2.500000e-01 : f32
    %4 = vector.broadcast %cst_2 : f32 to vector<1x128xf32>
    %5 = arith.mulf %3, %4 : vector<1x128xf32>
    %6 = vector.broadcast %5 : vector<1x128xf32> to vector<4x128xf32>
    %7 = arith.subf %1, %6 : vector<4x128xf32>
    %8 = arith.mulf %7, %7 : vector<4x128xf32>
    %cst_3 = arith.constant dense<0.000000e+00> : vector<128xf32>
    %9 = vector.multi_reduction <add>, %8, %cst_3 [0] : vector<4x128xf32> to vector<128xf32>
    %10 = vector.shape_cast %9 : vector<128xf32> to vector<1x128xf32>
    %cst_4 = arith.constant 2.500000e-01 : f32
    %11 = vector.broadcast %cst_4 : f32 to vector<1x128xf32>
    %12 = arith.mulf %10, %11 : vector<1x128xf32>
    %cst_5 = arith.constant 9.99999997E-7 : f32
    %13 = vector.broadcast %cst_5 : f32 to vector<1x128xf32>
    %14 = arith.addf %12, %13 : vector<1x128xf32>
    %15 = math.rsqrt %14 : vector<1x128xf32>
    %16 = vector.broadcast %15 : vector<1x128xf32> to vector<4x128xf32>
    %17 = arith.mulf %7, %16 : vector<4x128xf32>
    %c0_6 = arith.constant 0 : index
    %c0_7 = arith.constant 0 : index
    %18 = vector.load %arg3[%c0_6, %c0_7] : memref<4x1xf32, #tpu.memory_space<vmem>>, vector<4x1xf32>
    %19 = vector.broadcast %18 : vector<4x1xf32> to vector<4x128xf32>
    %20 = arith.mulf %17, %19 : vector<4x128xf32>
    %c0_8 = arith.constant 0 : index
    %c0_9 = arith.constant 0 : index
    %21 = vector.load %arg4[%c0_8, %c0_9] : memref<4x1xf32, #tpu.memory_space<vmem>>, vector<4x1xf32>
    %22 = vector.broadcast %21 : vector<4x1xf32> to vector<4x128xf32>
    %23 = arith.addf %20, %22 : vector<4x128xf32>
    %c0_10 = arith.constant 0 : index
    %c0_11 = arith.constant 0 : index
    %c0_12 = arith.constant 0 : index
    %24 = vector.load %arg5[%c0_10, %c0_11, %c0_12] : memref<1x4x128xf32, #tpu.memory_space<vmem>>, vector<1x4x128xf32>
    %25 = vector.shape_cast %24 : vector<1x4x128xf32> to vector<4x128xf32>
    %26 = vector.shape_cast %23 : vector<4x128xf32> to vector<1x4x128xf32>
    tpu.vector_store %arg5[%c0_10, %c0_11, %c0_12], %26 {strides = array<i32>} : memref<1x4x128xf32, #tpu.memory_space<vmem>>, vector<1x4x128xf32>,
    return
  }
  func.func @transform_0(%arg0: i32, %arg1: i32) -> (i32, i32, i32) {
    %c0_i32 = arith.constant 0 : i32
    %c0_i32_0 = arith.constant 0 : i32
    return %arg0, %c0_i32, %arg1 : i32, i32, i32
  }
  func.func @transform_1(%arg0: i32, %arg1: i32) -> (i32, i32) {
    %c0_i32 = arith.constant 0 : i32
    %c0_i32_0 = arith.constant 0 : i32
    %c0_i32_1 = arith.constant 0 : i32
    return %c0_i32, %c0_i32_0 : i32, i32
  }
  func.func @transform_2(%arg0: i32, %arg1: i32) -> (i32, i32) {
    %c0_i32 = arith.constant 0 : i32
    %c0_i32_0 = arith.constant 0 : i32
    %c0_i32_1 = arith.constant 0 : i32
    return %c0_i32, %c0_i32_0 : i32, i32
  }
  func.func @transform_3(%arg0: i32, %arg1: i32) -> (i32, i32, i32) {
    %c0_i32 = arith.constant 0 : i32
    %c0_i32_0 = arith.constant 0 : i32
    return %arg0, %c0_i32, %arg1 : i32, i32, i32
  }
}

</mosaic_0001>

<bundles_post_ra>
// kernel: tpu_custom_call.1
= control target key start
LH: loop header
LB: loop body
LE: loop exit
PB: predicated region body
PF: predicated region fallthrough
CT: control target
= control target key end

     0   :  { %8 = vsyncpa [#allocation3], 0  ;;  %s756_s0 = inlined_call_operand.hbm [shape: f32[2,4,256], index: 0, kind: input, shape index: {}]   ;;  %s757_s1 = inlined_call_operand.vmem [shape: f32[4,1], index: 1, kind: input, shape index: {}]   ;;  %s758_s2 = inlined_call_operand.vmem [shape: f32[4,1], index: 2, kind: input, shape index: {}]   ;;  %s759_s3 = inlined_call_operand.hbm [shape: f32[2,4,256], index: 3, kind: output, shape index: {}]  }
   0x1   :  { %10 = vsyncpa [#allocation3 + $0x1], 0 }
   0x2   :  { %11 = vsyncpa [#allocation4], 0 }
   0x3   :  { %13 = vsyncpa [#allocation4 + $0x1], 0  ;;  %s604_s12 = smov 0   ;;  %s606_s13 = smov 0  }
   0x4   :  { %s608_s14 = smov 0   ;;  %s610_s15 = smov 0  }
   0x5   :  { %s612_s16 = smov 0   ;;  %s614_s17 = smov 0  }
   0x6   :  { %s616_s18 = smov 0   ;;  %s618_s19 = smov 0  }
   0x7 LB: > { %s356_s20 = sadd.s32 4294967295, %s581_s19   ;;  %s357_s21 = sadd.s32 4294967294, %s581_s19   ;;  %s581_s19 = sphi %s618_s19, %s19_s19   ;;  %s577_s18 = sphi %s616_s18, %s773_s18   ;;  %s573_s17 = sphi %s614_s17, %s772_s17   ;;  %s569_s16 = sphi %s612_s16, %s771_s16   ;;  %s565_s15 = sphi %s610_s15, %s770_s15   ;;  %s561_s14 = sphi %s608_s14, %s769_s14   ;;  %s557_s13 = sphi %s606_s13, %s768_s13   ;;  %s553_s12 = sphi %s604_s12, %s767_s12  }
   0x8   : > { %s28_s22 = sadd.s32 1, %s573_s17  ;;  %s31_s23 = sadd.s32 1, %s577_s18 }
   0x9   : > { %p29_p0 = scmp.ge.s32.totalorder %s28_s22, 2  ;;  %s40_s24 = sadd.s32 1, %s561_s14 }
   0xa   : > { %p47_p1 = scmp.ne.s32.totalorder %s561_s14, %s557_s13  ;;  %p48_p2 = scmp.eq.s32.totalorder %s581_s19, 0 }
   0xb   : > { %s775_s22 = smov (%p29_p0, %s28_s22), 0  ;;  %s777_s23 = smov (!%p29_p0, %s31_s23), %s577_s18 }
   0xc   : > { %s36_s25 = ssub.s32 %s573_s17, %s775_s22  ;;  %p657_p3 = por %p48_p2, %p47_p1 }
   0xd   : > { %p33_p4 = scmp.ge.s32.totalorder %s777_s23, 2  ;;  %p53_p5 = scmp.ne.s32.totalorder %s557_s13, %s553_s12 }
   0xe   : > { %p54_p6 = scmp.eq.s32.totalorder %s356_s20, 0  ;;  %p121_p7 = scmp.eq.s32.totalorder %s356_s20, 3 }
   0xf   : > { %s779_s23 = smov (%p33_p4, %s777_s23), 0  ;;  %p127_p10 = scmp.eq.s32.totalorder %s357_s21, 3 }
  0x10   : > { %762 = sst [smem:[#allocation8_spill]] %s779_s23  ;;  %p665_p8 = por %p54_p6, %p53_p5 }
  0x11   : > { %p669_p9 = por %p121_p7, %p47_p1  ;;  %s35_s29 = ssub.s32 %s577_s18, %s779_s23 }
  0x12   : > { %s37_s30 = sor.u32 %s36_s25, %s35_s29  ;;  %p675_p12 = por %p127_p10, %p53_p5 }
  0x13   : > { %p38_p11 = scmp.eq.s32.totalorder %s37_s30, 0  ;;  %p383_p13 = scmp.lt.s32.totalorder %s581_s19, 4 }
  0x14   : > { %s153_s5 = sand.u32 1, %s561_s14   ;;  %s361_s8 = sshll.u32 %s577_s18, 1 }
  0x15   : > { %s682_s6 = scalar_select %p38_p11, %s561_s14, %s40_s24  }
  0x16   : > { %s360_s7 = sshll.u32 %s153_s5, 2  ;;  %s161_s9 = sadd.s32 %s573_s17, %s361_s8 }
  0x17   : > { %s157_s10 = scalar_lea.vmem [#allocation2], %s360_s7  ;;  %s362_s20 = sshll.u32 %s161_s9, 2 }
  0x18   : > { %s167_s11 = sshll.u32 %s157_s10, 4  ;;  %s163_s29 = scalar_lea.hbm %s756_s0, %s362_s20  ;;  %s168_s11 = int_to_ptr.vmem [resolvable:$true] %s167_s11 }
  0x19   : > { %p376_p0 = pnand %p383_p13, %p657_p3  ;;  %s165_s30 = sshll.u32 %s163_s29, 4  ;;  %s166_s30 = int_to_ptr.hbm [resolvable:$true] %s165_s30 }
  0x1a   : > { %p363_p1 = scmp.ge.s32.totalorder %s581_s19, 1  ;;  %s154_s23 = scalar_lea.sflag [#allocation3], %s153_s5 }
  0x1b   : > { %378 = dma.hbm_to_vmem [thread:$0]  (!%p376_p0), %s166_s30, 64, %s168_s11, %s154_s23  }
  0x1c   : > { %p172_p2 = scmp.lt.s32.totalorder %s581_s19, 5 }
  0x1e   : > { %p173_p4 = pnand %p363_p1, %p172_p2 }
  0x1f   : > { %s694_s24 = sand.u32 (!%p173_p4), 1, %s557_s13  }
  0x20   : > { %176 = sbr.rel (%p173_p4) target bundleno = 168 (0xa8), region = 32  ;;  %s364_s7 = sshll.u32 (!%p173_p4), %s694_s24, 2 }
  0x21   : > { %s179_s8 = scalar_lea.sflag (!%p173_p4), [#allocation3], %s694_s24  ;;  %s182_s26 = scalar_lea.vmem (!%p173_p4), [#allocation2], %s364_s7 }
  0x25   : > { %544 = dma.done.wait (%p665_p8), %s179_s8, 64  }
  0x26   : > { %546 = vsyncadd (%p665_p8), %s179_s8, 4294967232  ;;  %v583_v0 = vmov 0   ;;  %v238_v1 = vld [vmem:[%s757_s1] sm:$0xf]  ;;  %vm207_vm0 = vcmask 1043456   ;;  %s367_s27 = sshll.u32 %s569_s16, 1 }
  0x27   : > { %450 = vset.pattern.permute.xlu0 %v583_v0  ;;  %v245_v2 = vld [vmem:[%s758_s2] sm:$0xf]  ;;  %s264_s11 = sadd.s32 %s565_s15, %s367_s27  ;;  %s205_s30 = scalar_lea.vmem [#allocation5], %s364_s7 }
  0x28   : > { %241 = vperm.xlu0 %450, %v238_v1   ;;  %v206_v3 = vld [vmem:[%s182_s26] sm:$0xf]  ;;  %s368_s20 = sshll.u32 %s264_s11, 2  ;;  %s268_s8 = sshll.u32 %s205_s30, 4  ;;  %s269_s8 = int_to_ptr.vmem [resolvable:$true] %s268_s8 }
  0x29   : > { %v208_v4 = vsel %vm207_vm0, %v206_v3, 0.0  ;;  %s266_s29 = scalar_lea.hbm %s759_s3, %s368_s20  ;;  %s254_s15 = scalar_lea.sflag [#allocation4], %s694_s24 }
  0x2a   : > { %v209_v5 = vrot.slane %v208_v4, 4  ;;  %s270_s26 = sshll.u32 %s266_s29, 4  ;;  %s503_s7 = scalar_lea.hbm %s759_s3, 16  ;;  %s271_s26 = int_to_ptr.hbm [resolvable:$true] %s270_s26 }
  0x2b   : > { %s497_s16 = sshra.s32 %s271_s26, 4  ;;  %s498_s16 = int_to_ptr.hbm [resolvable:$true] %s497_s16 }
  0x2c   : > { %v210_v6 = vadd.f32 %v209_v5, %v208_v4  ;;  %s499_s23 = scalar_lea.hbm %s498_s16, 4  ;;  %p504_p7 = scmp.lt.s32.totalorder %s498_s16, %s759_s3 }
  0x2d   : > { %p500_p3 = scmp.ne.s32.totalorder %s498_s16, %s499_s23  ;;  %p505_p8 = scmp.lt.s32.totalorder %s503_s7, %s499_s23 }
  0x2e   : > { %v211_v7 = vrot.slane %v210_v6, 2 }
  0x2f   : > { %p501_p5 = pnand %p500_p3, %p669_p9  ;;  %p506_p10 = por %p505_p8, %p504_p7 }
  0x30   : > { %248 = vperm.xlu0 %450, %v245_v2   ;;  %v212_v8 = vadd.f32 %v211_v7, %v210_v6 }
  0x31   : > { %p502_p6 = pneg %p501_p5 }
  0x32   : > { %v213_v9 = vrot.slane %v212_v8, 1 }
  0x33   : > { %p507_p11 = pnand %p506_p10, %p502_p6 }
  0x34   : > { %v214_v10 = vadd.f32 %v213_v9, %v212_v8 }
  0x36   : > { %v215_v11 = vmul.f32 0.25, %v214_v10 }
  0x38   : > { %v216_v12 = vsub.f32 %v206_v3, %v215_v11 }
  0x3a   : > { %v217_v13 = vmul.f32 %v216_v12, %v216_v12 }
  0x3c   : > { %v218_v14 = vsel %vm207_vm0, %v217_v13, 0.0 }
  0x3d   : > { %v219_v15 = vrot.slane %v218_v14, 4 }
  0x3f   : > { %v220_v16 = vadd.f32 %v219_v15, %v218_v14 }
  0x41   : > { %v221_v17 = vrot.slane %v220_v16, 2 }
  0x43   : > { %v222_v18 = vadd.f32 %v221_v17, %v220_v16 }
  0x45   : > { %v223_v19 = vrot.slane %v222_v18, 1 }
  0x47   : > { %v224_v20 = vadd.f32 %v223_v19, %v222_v18 }
  0x49   : > { %v225_v21 = vmul.f32 0.25, %v224_v20 }
  0x4b   : > { %v226_v22 = vadd.f32 1e-06, %v225_v21 }
  0x4d   : > { %451 = vrsqrt.f32 %v226_v22  ;;  %vm233_vm1 = vweird.f32 %v226_v22 }
  0x53   : > { %v452_v23 = vpop.eup %451 }
  0x54   : > { %v228_v24 = vmul.f32 %v452_v23, %v226_v22  ;;  %vm234_vm2 = vweird.f32 %v452_v23 }
  0x55   : > { %vm235_vm3 = vmor %vm233_vm1, %vm234_vm2 }
  0x56   : > { %v229_v25 = vmul.f32 %v452_v23, %v228_v24 }
  0x58   : > { %v230_v26 = vmul.f32 0.5, %v229_v25 }
  0x5a   : > { %v231_v27 = vsub.f32 1.5, %v230_v26 }
  0x5c   : > { %v232_v28 = vmul.f32 %v452_v23, %v231_v27 }
  0x5e   : > { %v236_v30 = vsel %vm235_vm3, %v452_v23, %v232_v28 }
  0x5f   : > { %v237_v31 = vmul.f32 %v236_v30, %v216_v12 }
  0x9a   : > { %v242_v29 = vpop.permute.xlu0 %241 }
  0x9b   : > { %v244_v32 = vmul.f32 %v242_v29, %v237_v31 }
  0xa2   : > { %v249_v33 = vpop.permute.xlu0 %248 }
  0xa3   : > { %v251_v34 = vadd.f32 %v249_v33, %v244_v32 }
  0xa5   : > { %252 = vst [vmem:[%s205_s30] sm:$0xf] %v251_v34 }
  0xa6   : > { %510 = shalt.err (!%p507_p11)
}
  0xa7   : > { %373 = dma.vmem_to_hbm [thread:$0]  (%p669_p9), %s269_s8, 64, %s271_s26, %s254_s15  }
  0xa8 PF: > { %p384_p13 = scmp.ge.s32.totalorder %s581_s19, 2  ;;  %s282_s24 = sand.u32 1, %s553_s12  }
  0xa9   : > { %s283_s11 = scalar_lea.sflag [#allocation4], %s282_s24 }
  0xaa   : > { %p380_p0 = pnand %p384_p13, %p675_p12 }
  0xac   : > { %p381_p1 = pneg %p380_p0 }
  0xae   : > { %548 = dma.done.wait (%p381_p1), %s283_s11, 64  }
  0xaf   : > { %550 = vsyncadd (%p381_p1), %s283_s11, 4294967232  ;;  %s19_s19 = sadd.s32 1, %s581_s19   ;;  %s766_s28 = sld [smem:[#allocation8_spill]] }
  0xb0   : > { %p16_p2 = scmp.ge.s32.totalorder %s19_s19, 6   ;;  %s767_s12 = smov %s557_s13 }
  0xb1   : > { %s768_s13 = smov %s561_s14  ;;  %s769_s14 = smov %s682_s6 }
  0xb2   : > { %s770_s15 = smov %s573_s17  ;;  %s771_s16 = smov %s577_s18 }
  0xb3   : > { %s772_s17 = smov %s775_s22  ;;  %18 = sbr.rel (!%p16_p2) target bundleno = 7 (0x7), region = 77 }
  0xb5   : > { %s773_s18 = smov %s766_s28 }
  0xb8   :  { %289 = vsyncpa [#allocation3], 1 }
  0xb9   :  { %291 = vsyncpa [#allocation3 + $0x1], 1 }
  0xba   :  { %292 = vsyncpa [#allocation4], 1 }
  0xbb   :  { %294 = vsyncpa [#allocation4 + $0x1], 1 }

</bundles_post_ra>
